<compile_context>
chip_gen: v7x
topology: tpu7x:2x2x1
jax: 0.10.0
libtpu: 0.0.40
codegen_flags: <defaults>
</compile_context>

<pallas_src>
import functools
import math

import jax
import jax.numpy as jnp
from jax import lax
from jax.experimental import pallas as pl
from jax.experimental.pallas import tpu as pltpu

IGNORE_LABEL = 255
THRESH = -math.log(0.7)                 # matches -torch.log(tensor(0.7))
AUX_WEIGHTS = (1.0, 1.0)

MAX_TILE_P = 32768                      # pixels (lanes) per grid step
LOGITS_TILE_BUDGET = 2 * 1024 * 1024    # bytes of logits per tile (x2 dbl-buf)


# --------------------------- in-kernel CE math -------------------------------
def _ce_loss(logits, labels, valid):
    """Per-pixel cross entropy.

    logits: (C, TP) in the *input* dtype (bf16 stays bf16 for max/sub),
    labels: (1, TP) int32, valid: (1, TP) bool.
    Returns (1, TP) float32 loss, exactly 0.0 at invalid lanes (garbage /
    NaN bits in masked lanes stay lane-confined and are selected away).
    """
    m = jnp.max(logits, axis=0, keepdims=True)            # native-dtype VPU max
    shifted = logits - m                                   # native-dtype sub
    shifted_f32 = shifted.astype(jnp.float32)              # cast only at exp
    # EUP exp + f32 accumulation.  (v5e note: EUP has no bf16; the single f32
    # exp pass over the C sublane rows is already the minimal exp count.)
    lse = jnp.log(jnp.sum(jnp.exp(shifted_f32), axis=0, keepdims=True))
    tgt = jnp.where(valid, labels, 0)                      # (1, TP)
    class_ids = lax.broadcasted_iota(jnp.int32, logits.shape, 0)
    onehot = class_ids == tgt                               # (C, TP)
    tgt_shifted = jnp.sum(jnp.where(onehot, shifted_f32, 0.0),
                          axis=0, keepdims=True)            # (1, TP)
    return jnp.where(valid, lse - tgt_shifted, 0.0)


def _valid_mask(labels, ignore_label, hw, tile_p):
    valid = labels != ignore_label
    if hw % tile_p != 0:
        # Ragged last tile: mask OOB lanes by *global pixel index* so the
        # garbage data Pallas DMAs for the out-of-bounds window never
        # contributes to the stats.
        i = pl.program_id(1)
        gidx = i * tile_p + lax.broadcasted_iota(jnp.int32, labels.shape, 1)
        valid = jnp.logical_and(valid, gidx < hw)
    return valid


# ----------------------------- kernels ---------------------------------------
def _ohem_stats_kernel(logits_ref, labels_ref, stats_ref, *,
                       ignore_label, thresh, hw, tile_p):
    # logits_ref: (C, TP) native dtype ; labels_ref: (1, TP) i32
    # stats_ref:  (1, 128) f32 per-tile row: [valid_cnt, hard_cnt, hard_sum]
    labels = labels_ref[...]
    valid = _valid_mask(labels, ignore_label, hw, tile_p)
    loss = _ce_loss(logits_ref[...], labels, valid)         # (1, TP) f32

    valid_cnt = jnp.sum(valid.astype(jnp.float32))
    hard_mask = loss > thresh
    hard_cnt = jnp.sum(hard_mask.astype(jnp.float32))
    hard_sum = jnp.sum(jnp.where(hard_mask, loss, 0.0))

    lane = lax.broadcasted_iota(jnp.int32, stats_ref.shape, 1)   # (1, 128)
    stats_ref[...] = jnp.where(lane == 0, valid_cnt,
                     jnp.where(lane == 1, hard_cnt,
                     jnp.where(lane == 2, hard_sum, 0.0)))


def _ohem_loss_kernel(logits_ref, labels_ref, loss_ref, *,
                      ignore_label, hw, tile_p):
    # Only runs in the rare top-k fallback (lax.cond branch).
    labels = labels_ref[...]
    valid = _valid_mask(labels, ignore_label, hw, tile_p)
    loss_ref[...] = _ce_loss(logits_ref[...], labels, valid)


# ----------------------------- wrapper ----------------------------------------
def _choose_tile(num_classes, hw, itemsize):
    """Biggest lane-tile under the per-tile logits budget (>= ~2 MiB for small
    C).  Prefer a 128-multiple divisor of the 128-aligned pixel count (no
    ragged tail) when one exists within 2x of the cap; otherwise take the cap
    and mask the ragged last tile in-kernel (no padding copy either way)."""
    hw128 = pl.cdiv(hw, 128) * 128
    cap = (LOGITS_TILE_BUDGET // max(num_classes * itemsize, 1)) // 128 * 128
    cap = max(128, min(cap, MAX_TILE_P, hw128))
    for t in range(cap, max(cap // 2 - 1, 127), -128):
        if hw128 % t == 0:
            return t
    return cap


def _vmem_limit_bytes(num_classes, tile_p, itemsize):
    """Explicit scoped-VMEM limit: 2x double-buffered logits tile + a few
    full-tile f32 temporaries + small label/loss/mask rows, clamped to stay
    above v5e's 16 MiB default and safely below v7x's 64 MiB/TC physical."""
    logits_tile = num_classes * tile_p * itemsize
    f32_pass = num_classes * tile_p * 4
    small = 8 * tile_p * 4
    est = 2 * logits_tile + 4 * f32_pass + 4 * small + (2 << 20)
    return int(min(max(est, 32 << 20), 56 << 20))


def _ohem_forward_single(preds, labels, *, ignore_label=IGNORE_LABEL,
                         thresh=THRESH):
    """preds: (N, C, H, W) float, labels: (N, 1, H, W) int -> scalar loss."""
    N, C, H, W = preds.shape
    hw = H * W

    # Native NCHW layout: reshapes only — no transpose, no cast, no pad copy.
    logits = preds.reshape(N, C, hw)
    labels_i = labels[:, :1].reshape(N, 1, hw).astype(jnp.int32)

    itemsize = jnp.dtype(preds.dtype).itemsize
    tile_p = _choose_tile(C, hw, itemsize)
    num_tiles = pl.cdiv(hw, tile_p)
    vmem_limit = _vmem_limit_bytes(C, tile_p, itemsize)

    in_specs = [
        pl.BlockSpec((None, C, tile_p), lambda n, i: (n, 0, i)),
        pl.BlockSpec((None, 1, tile_p), lambda n, i: (n, 0, i)),
    ]
    cparams = pltpu.CompilerParams(
        dimension_semantics=("parallel", "parallel"),
        vmem_limit_bytes=vmem_limit)

    # ---- stats-only kernel (always runs; no loss-map HBM write) ----
    stats = pl.pallas_call(
        functools.partial(_ohem_stats_kernel, ignore_label=ignore_label,
                          thresh=thresh, hw=hw, tile_p=tile_p),
        out_shape=jax.ShapeDtypeStruct((N, num_tiles, 1, 128), jnp.float32),
        grid_spec=pltpu.PrefetchScalarGridSpec(
            num_scalar_prefetch=0,
            grid=(N, num_tiles),
            in_specs=in_specs,
            out_specs=pl.BlockSpec((None, None, 1, 128),
                                   lambda n, i: (n, i, 0, 0)),
        ),
        compiler_params=cparams,
    )(logits, labels_i)

    totals = jnp.sum(stats, axis=(0, 1, 2))                 # (128,)
    valid_cnt, hard_cnt, hard_sum = totals[0], totals[1], totals[2]
    n_min = valid_cnt.astype(jnp.int32) // 16

    def _mean_hard():
        # guard 0/0 (no hard pixels & n_min == 0 degenerate case -> 0.0)
        return hard_sum / jnp.maximum(hard_cnt, 1.0)

    def _topk_mean():
        # Rare dynamic-k fallback: recompute the per-pixel loss map (second
        # kernel, only traffic when this branch actually executes), then
        # exact top-k via sort + prefix sum.
        loss_map = pl.pallas_call(
            functools.partial(_ohem_loss_kernel, ignore_label=ignore_label,
                              hw=hw, tile_p=tile_p),
            out_shape=jax.ShapeDtypeStruct((N, 1, hw), jnp.float32),
            grid_spec=pltpu.PrefetchScalarGridSpec(
                num_scalar_prefetch=0,
                grid=(N, num_tiles),
                in_specs=in_specs,
                out_specs=pl.BlockSpec((None, 1, tile_p),
                                       lambda n, i: (n, 0, i)),
            ),
            compiler_params=cparams,
        )(logits, labels_i)
        k = jnp.maximum(n_min, 1)
        srt = jnp.sort(loss_map.reshape(-1))[::-1]
        csum = jnp.cumsum(srt)
        return csum[k - 1] / k.astype(jnp.float32)

    # Only pay for the loss-map write + O(P log P) sort when the threshold did
    # not yield at least n_min hard pixels.
    return lax.cond(hard_cnt < n_min.astype(jnp.float32), _topk_mean, _mean_hard)


def ohem_cross_entropy(preds, labels, *, aux_weights=AUX_WEIGHTS):
    """Mirrors OhemCrossEntropy.forward: preds may be a tuple of logits."""
    if isinstance(preds, (tuple, list)):
        return sum(w * _ohem_forward_single(p, labels)
                   for p, w in zip(preds, aux_weights))
    return _ohem_forward_single(preds, labels)


# ------------------------- pure-JAX reference --------------------------------
def _ref_forward_single(preds, labels, ignore_label=IGNORE_LABEL, thresh=THRESH):
    N, C, H, W = preds.shape
    lab = labels[:, 0, :, :].reshape(-1).astype(jnp.int32)
    logits = jnp.transpose(preds, (0, 2, 3, 1)).reshape(-1, C).astype(jnp.float32)
    logp = jax.nn.log_softmax(logits, axis=-1)
    valid = lab != ignore_label
    tgt = jnp.where(valid, lab, 0)
    ce = -jnp.take_along_axis(logp, tgt[:, None], axis=1)[:, 0]
    loss = jnp.where(valid, ce, 0.0)
    n_min = jnp.sum(valid).astype(jnp.int32) // 16
    hard = loss > thresh
    hard_cnt = jnp.sum(hard.astype(jnp.float32))
    mean_hard = jnp.sum(jnp.where(hard, loss, 0.0)) / jnp.maximum(hard_cnt, 1.0)
    srt = jnp.sort(loss)[::-1]
    csum = jnp.cumsum(srt)
    k = jnp.maximum(n_min, 1)
    topk_mean = csum[k - 1] / k.astype(jnp.float32)
    return jnp.where(hard_cnt < n_min.astype(jnp.float32), topk_mean, mean_hard)


if __name__ == "__main__":
    key = jax.random.PRNGKey(0)
    k1, k2, k3, k4, k5, k6 = jax.random.split(key, 6)

    # 1) base case (128-aligned H*W, common "enough hard pixels" path)
    N, C, H, W = 2, 4, 16, 16
    preds = jax.random.normal(k1, (N, C, H, W), dtype=jnp.float32)
    raw = jax.random.randint(k2, (N, 1, H, W), 0, C, dtype=jnp.int32)
    ign = jax.random.uniform(k3, (N, 1, H, W)) < 0.1
    labels = jnp.where(ign, IGNORE_LABEL, raw)
    out = jax.block_until_ready(ohem_cross_entropy(preds, labels))
    ref = _ref_forward_single(preds, labels)
    assert out.shape == ()
    assert jnp.allclose(out, ref, rtol=1e-4, atol=1e-5), (out, ref)

    # 2) ragged H*W (15*15 = 225, not a multiple of 128) -> in-kernel OOB mask
    N2, C2, H2, W2 = 1, 5, 15, 15
    preds2 = jax.random.normal(k4, (N2, C2, H2, W2), dtype=jnp.float32)
    raw2 = jax.random.randint(k5, (N2, 1, H2, W2), 0, C2, dtype=jnp.int32)
    ign2 = jax.random.uniform(k6, (N2, 1, H2, W2)) < 0.1
    labels2 = jnp.where(ign2, IGNORE_LABEL, raw2)
    out2 = jax.block_until_ready(ohem_cross_entropy(preds2, labels2))
    ref2 = _ref_forward_single(preds2, labels2)
    assert jnp.allclose(out2, ref2, rtol=1e-4, atol=1e-5), (out2, ref2)

    # 3) peaked logits -> too few hard pixels -> exercises the top-k fallback
    onehot = jax.nn.one_hot(raw2[:, 0], C2, dtype=jnp.float32)     # (N,H,W,C)
    preds3 = 10.0 * jnp.transpose(onehot, (0, 3, 1, 2))            # (N,C,H,W)
    out3 = jax.block_until_ready(ohem_cross_entropy(preds3, labels2))
    ref3 = _ref_forward_single(preds3, labels2)
    assert jnp.allclose(out3, ref3, rtol=1e-4, atol=1e-5), (out3, ref3)

    print("KERNEL_OK")
</pallas_src>

<mosaic_0001>
module attributes {stable_mosaic.version = 11 : i64} {
  func.func @_ohem_stats_kernel(%arg0: i32, %arg1: i32, %arg2: memref<1x4x256xf32, #tpu.memory_space<vmem>>, %arg3: memref<1x1x256xi32, #tpu.memory_space<vmem>>, %arg4: memref<1x1x1x128xf32, #tpu.memory_space<vmem>>) attributes {dimension_semantics = [#tpu.dimension_semantics<parallel>, #tpu.dimension_semantics<parallel>], iteration_bounds = array<i64: 2, 1>, scalar_prefetch = 0 : i64, scratch_operands = 0 : i64, tpu.core_type = #tpu.core_type<tc>, window_params = [{transform_indices = @transform_0, window_bounds = array<i64: 1, 4, 256>}, {transform_indices = @transform_1, window_bounds = array<i64: 1, 1, 256>}, {transform_indices = @transform_2, window_bounds = array<i64: 1, 1, 1, 128>}]} {
    %c0 = arith.constant 0 : index
    %c0_0 = arith.constant 0 : index
    %c0_1 = arith.constant 0 : index
    %0 = vector.load %arg3[%c0, %c0_0, %c0_1] : memref<1x1x256xi32, #tpu.memory_space<vmem>>, vector<1x1x256xi32>
    %1 = vector.shape_cast %0 : vector<1x1x256xi32> to vector<1x256xi32>
    %c255_i32 = arith.constant 255 : i32
    %2 = vector.broadcast %c255_i32 : i32 to vector<1x256xi32>
    %3 = arith.cmpi ne, %1, %2 : vector<1x256xi32>
    %c0_2 = arith.constant 0 : index
    %c0_3 = arith.constant 0 : index
    %c0_4 = arith.constant 0 : index
    %4 = vector.load %arg2[%c0_2, %c0_3, %c0_4] : memref<1x4x256xf32, #tpu.memory_space<vmem>>, vector<1x4x256xf32>
    %5 = vector.shape_cast %4 : vector<1x4x256xf32> to vector<4x256xf32>
    %cst = arith.constant dense<0xFF800000> : vector<256xf32>
    %6 = vector.multi_reduction <maximumf>, %5, %cst [0] : vector<4x256xf32> to vector<256xf32>
    %7 = vector.shape_cast %6 : vector<256xf32> to vector<1x256xf32>
    %8 = vector.broadcast %7 : vector<1x256xf32> to vector<4x256xf32>
    %9 = arith.subf %5, %8 : vector<4x256xf32>
    %10 = math.exp %9 : vector<4x256xf32>
    %cst_5 = arith.constant dense<0.000000e+00> : vector<256xf32>
    %11 = vector.multi_reduction <add>, %10, %cst_5 [0] : vector<4x256xf32> to vector<256xf32>
    %12 = vector.shape_cast %11 : vector<256xf32> to vector<1x256xf32>
    %13 = math.log %12 : vector<1x256xf32>
    %c0_i32 = arith.constant 0 : i32
    %14 = vector.broadcast %c0_i32 : i32 to vector<1x256xi32>
    %15 = arith.select %3, %1, %14 : vector<1x256xi1>, vector<1x256xi32>
    %16 = tpu.iota {dimensions = array<i32: 0>} : vector<4x256xi32>
    %17 = vector.broadcast %15 : vector<1x256xi32> to vector<4x256xi32>
    %18 = arith.cmpi eq, %16, %17 : vector<4x256xi32>
    %cst_6 = arith.constant 0.000000e+00 : f32
    %19 = vector.broadcast %cst_6 : f32 to vector<4x256xf32>
    %20 = arith.select %18, %9, %19 : vector<4x256xi1>, vector<4x256xf32>
    %cst_7 = arith.constant dense<0.000000e+00> : vector<256xf32>
    %21 = vector.multi_reduction <add>, %20, %cst_7 [0] : vector<4x256xf32> to vector<256xf32>
    %22 = vector.shape_cast %21 : vector<256xf32> to vector<1x256xf32>
    %23 = arith.subf %13, %22 : vector<1x256xf32>
    %cst_8 = arith.constant 0.000000e+00 : f32
    %24 = vector.broadcast %cst_8 : f32 to vector<1x256xf32>
    %25 = arith.select %3, %23, %24 : vector<1x256xi1>, vector<1x256xf32>
    %26 = arith.extui %3 : vector<1x256xi1> to vector<1x256xi32>
    %27 = arith.sitofp %26 : vector<1x256xi32> to vector<1x256xf32>
    %28 = vector.shape_cast %27 : vector<1x256xf32> to vector<1x1x256xf32>
    %cst_9 = arith.constant dense<0.000000e+00> : vector<1xf32>
    %29 = vector.multi_reduction <add>, %28, %cst_9 [1, 2] : vector<1x1x256xf32> to vector<1xf32>
    %30 = vector.shape_cast %29 : vector<1xf32> to vector<1x1x1xf32>
    %31 = vector.extract %30[0, 0, 0] : f32 from vector<1x1x1xf32>
    %cst_10 = arith.constant 0.356674939 : f32
    %32 = vector.broadcast %cst_10 : f32 to vector<1x256xf32>
    %33 = arith.cmpf ogt, %25, %32 : vector<1x256xf32>
    %34 = arith.extui %33 : vector<1x256xi1> to vector<1x256xi32>
    %35 = arith.sitofp %34 : vector<1x256xi32> to vector<1x256xf32>
    %36 = vector.shape_cast %35 : vector<1x256xf32> to vector<1x1x256xf32>
    %cst_11 = arith.constant dense<0.000000e+00> : vector<1xf32>
    %37 = vector.multi_reduction <add>, %36, %cst_11 [1, 2] : vector<1x1x256xf32> to vector<1xf32>
    %38 = vector.shape_cast %37 : vector<1xf32> to vector<1x1x1xf32>
    %39 = vector.extract %38[0, 0, 0] : f32 from vector<1x1x1xf32>
    %cst_12 = arith.constant 0.000000e+00 : f32
    %40 = vector.broadcast %cst_12 : f32 to vector<1x256xf32>
    %41 = arith.select %33, %25, %40 : vector<1x256xi1>, vector<1x256xf32>
    %42 = vector.shape_cast %41 : vector<1x256xf32> to vector<1x1x256xf32>
    %cst_13 = arith.constant dense<0.000000e+00> : vector<1xf32>
    %43 = vector.multi_reduction <add>, %42, %cst_13 [1, 2] : vector<1x1x256xf32> to vector<1xf32>
    %44 = vector.shape_cast %43 : vector<1xf32> to vector<1x1x1xf32>
    %45 = vector.extract %44[0, 0, 0] : f32 from vector<1x1x1xf32>
    %46 = tpu.iota {dimensions = array<i32: 1>} : vector<1x128xi32>
    %c0_i32_14 = arith.constant 0 : i32
    %47 = vector.broadcast %c0_i32_14 : i32 to vector<1x128xi32>
    %48 = arith.cmpi eq, %46, %47 : vector<1x128xi32>
    %c1_i32 = arith.constant 1 : i32
    %49 = vector.broadcast %c1_i32 : i32 to vector<1x128xi32>
    %50 = arith.cmpi eq, %46, %49 : vector<1x128xi32>
    %c2_i32 = arith.constant 2 : i32
    %51 = vector.broadcast %c2_i32 : i32 to vector<1x128xi32>
    %52 = arith.cmpi eq, %46, %51 : vector<1x128xi32>
    %cst_15 = arith.constant 0.000000e+00 : f32
    %53 = vector.broadcast %45 : f32 to vector<1x128xf32>
    %54 = vector.broadcast %cst_15 : f32 to vector<1x128xf32>
    %55 = arith.select %52, %53, %54 : vector<1x128xi1>, vector<1x128xf32>
    %56 = vector.broadcast %39 : f32 to vector<1x128xf32>
    %57 = arith.select %50, %56, %55 : vector<1x128xi1>, vector<1x128xf32>
    %58 = vector.broadcast %31 : f32 to vector<1x128xf32>
    %59 = arith.select %48, %58, %57 : vector<1x128xi1>, vector<1x128xf32>
    %c0_16 = arith.constant 0 : index
    %c0_17 = arith.constant 0 : index
    %c0_18 = arith.constant 0 : index
    %c0_19 = arith.constant 0 : index
    %60 = vector.load %arg4[%c0_16, %c0_17, %c0_18, %c0_19] : memref<1x1x1x128xf32, #tpu.memory_space<vmem>>, vector<1x1x1x128xf32>
    %61 = vector.shape_cast %60 : vector<1x1x1x128xf32> to vector<1x128xf32>
    %62 = vector.shape_cast %59 : vector<1x128xf32> to vector<1x1x1x128xf32>
    tpu.vector_store %arg4[%c0_16, %c0_17, %c0_18, %c0_19], %62 {strides = array<i32>} : memref<1x1x1x128xf32, #tpu.memory_space<vmem>>, vector<1x1x1x128xf32>,
    return
  }
  func.func @transform_0(%arg0: i32, %arg1: i32) -> (i32, i32, i32) {
    %c0_i32 = arith.constant 0 : i32
    %c0_i32_0 = arith.constant 0 : i32
    return %arg0, %c0_i32, %arg1 : i32, i32, i32
  }
  func.func @transform_1(%arg0: i32, %arg1: i32) -> (i32, i32, i32) {
    %c0_i32 = arith.constant 0 : i32
    %c0_i32_0 = arith.constant 0 : i32
    return %arg0, %c0_i32, %arg1 : i32, i32, i32
  }
  func.func @transform_2(%arg0: i32, %arg1: i32) -> (i32, i32, i32, i32) {
    %c0_i32 = arith.constant 0 : i32
    %c0_i32_0 = arith.constant 0 : i32
    %c0_i32_1 = arith.constant 0 : i32
    return %arg0, %arg1, %c0_i32, %c0_i32_0 : i32, i32, i32, i32
  }
}

</mosaic_0001>

<bundles_post_ra>
// kernel: tpu_custom_call.1
= control target key start
LH: loop header
LB: loop body
LE: loop exit
PB: predicated region body
PF: predicated region fallthrough
CT: control target
= control target key end

     0   :  { %7 = vsyncpa [#allocation3], 0  ;;  %s1060_s0 = inlined_call_operand.hbm [shape: f32[2,4,256], index: 0, kind: input, shape index: {}]   ;;  %s1061_s1 = inlined_call_operand.hbm [shape: s32[2,1,256], index: 1, kind: input, shape index: {}]   ;;  %s1062_s2 = inlined_call_operand.hbm [shape: f32[2,1,1,128], index: 2, kind: output, shape index: {}]  }
   0x1   :  { %9 = vsyncpa [#allocation3 + $0x1], 0 }
   0x2   :  { %10 = vsyncpa [#allocation6], 0 }
   0x3   :  { %12 = vsyncpa [#allocation6 + $0x1], 0 }
   0x4   :  { %13 = vsyncpa [#allocation4], 0 }
   0x5   :  { %15 = vsyncpa [#allocation4 + $0x1], 0  ;;  %s799_s9 = smov 0   ;;  %s801_s10 = smov 0  }
   0x6   :  { %s803_s11 = smov 0   ;;  %s805_s12 = smov 0  }
   0x7   :  { %s807_s13 = smov 0   ;;  %s809_s14 = smov 0  }
   0x8 LB: > { %s529_s15 = sadd.s32 4294967295, %s777_s14   ;;  %s530_s16 = sadd.s32 4294967294, %s777_s14   ;;  %s777_s14 = sphi %s809_s14, %s21_s14   ;;  %s773_s13 = sphi %s807_s13, %s1082_s13   ;;  %s769_s12 = sphi %s805_s12, %s1081_s12   ;;  %s765_s11 = sphi %s803_s11, %s1080_s11   ;;  %s761_s10 = sphi %s801_s10, %s1079_s10   ;;  %s757_s9 = sphi %s799_s9, %s1078_s9  }
   0x9   : > { %s33_s17 = sadd.s32 1, %s773_s13  ;;  %s42_s18 = sadd.s32 1, %s765_s11 }
   0xa   : > { %p35_p0 = scmp.ge.s32.totalorder %s33_s17, 2  ;;  %p49_p1 = scmp.ne.s32.totalorder %s765_s11, %s761_s10 }
   0xb   : > { %p50_p2 = scmp.eq.s32.totalorder %s777_s14, 0  ;;  %p55_p3 = scmp.ne.s32.totalorder %s761_s10, %s757_s9 }
   0xc   : > { %s1084_s17 = smov (%p35_p0, %s33_s17), 0  ;;  %p56_p5 = scmp.eq.s32.totalorder %s529_s15, 0 }
   0xd   : > { %p840_p4 = por %p50_p2, %p49_p1  ;;  %s37_s20 = ssub.s32 %s773_s13, %s1084_s17 }
   0xe   : > { %p109_p6 = scmp.eq.s32.totalorder %s529_s15, 1  ;;  %p40_p7 = scmp.eq.s32.totalorder %s37_s20, 0 }
   0xf   : > { %p846_p8 = por %p56_p5, %p55_p3  ;;  %p115_p10 = scmp.eq.s32.totalorder %s530_s16, 1 }
  0x10   : > { %p850_p9 = por %p109_p6, %p49_p1  ;;  %p572_p13 = scmp.lt.s32.totalorder %s777_s14, 2 }
  0x11   : > { %s1066_s21 = scalar_select %p846_p8, 1, 0 }
  0x12   : > { %s1067_s22 = scalar_select %p850_p9, 1, 0 }
  0x13   : > { %s855_s23 = scalar_select %p40_p7, %s765_s11, %s42_s18  }
  0x14   : > { %p857_p11 = por %p115_p10, %p55_p3  ;;  %s864_s25 = sand.u32 1, %s765_s11  }
  0x15   : > { %s533_s26 = sshll.u32 %s864_s25, 3  ;;  %s547_s27 = sshll.u32 %s773_s13, 7 }
  0x16   : > { %s1068_s24 = scalar_select %p857_p11, 1, 0 }
  0x17   : > { %s871_s30 = scalar_lea.hbm %s1060_s0, %s547_s27  ;;  %s139_s3 = scalar_lea.vmem [#allocation2], %s533_s26 }
  0x18   : > { %s149_s4 = sshll.u32 %s139_s3, 4  ;;  %p877_p0 = pnand %p572_p13, %p840_p4  ;;  %s873_s4 = int_to_ptr.vmem [resolvable:$true] %s149_s4 }
  0x19   : > { %s136_s6 = scalar_lea.sflag [#allocation3], %s864_s25  ;;  %s631_s7 = scalar_lea.hbm %s871_s30, 128 }
  0x1a   : > { %p632_p3 = scmp.ne.s32.totalorder %s871_s30, %s631_s7  ;;  %p633_p5 = pneg %p877_p0 }
  0x1b   : > { %s636_s16 = scalar_lea.hbm %s1060_s0, 256  ;;  %p637_p4 = scmp.lt.u32.totalorder %s871_s30, %s1060_s0 }
  0x1c   : > { %p634_p6 = pnand %p633_p5, %p632_p3  ;;  %p638_p10 = scmp.lt.u32.totalorder %s636_s16, %s631_s7 }
  0x1d   : > { %p640_p12 = scmp.lt.u32.totalorder %s631_s7, %s871_s30 }
  0x1e   : > { %p635_p7 = pneg %p634_p6  ;;  %p639_p13 = por %p638_p10, %p637_p4 }
  0x20   : > { %p641_p1 = por %p640_p12, %p639_p13 }
  0x22   : > { %p642_p2 = pnand %p641_p1, %p635_p7 }
  0x24   : > { %645 = shalt.err (!%p642_p2)
}
  0x25   : > { %s646_s20 = scalar_lea.vmem %s873_s4, 128  ;;  %s779_s26 = smov [#allocation2]  }
  0x26   : > { %p647_p3 = scmp.ne.s32.totalorder %s873_s4, %s646_s20  ;;  %s651_s27 = sshll.u32 %s779_s26, 4  ;;  %s652_s27 = int_to_ptr.vmem [resolvable:$false] %s651_s27 }
  0x27   : > { %s653_s28 = scalar_lea.vmem %s652_s27, 256  ;;  %p654_p9 = scmp.lt.s32.totalorder %s873_s4, %s652_s27 }
  0x28   : > { %p649_p6 = pnand %p647_p3, %p633_p5  ;;  %p655_p4 = scmp.lt.s32.totalorder %s653_s28, %s646_s20 }
  0x2a   : > { %p650_p11 = pneg %p649_p6  ;;  %p656_p10 = por %p655_p4, %p654_p9 }
  0x2c   : > { %p657_p12 = pnand %p656_p10, %p650_p11 }
  0x2e   : > { %660 = shalt.err (!%p657_p12)
}
  0x2f   : > { %564 = dma.hbm_to_vmem [thread:$0]  (!%p877_p0), %s871_s30, 128, %s873_s4, %s136_s6  }
  0x30   : > { %p1070_p1 = scmp.lt.s32.totalorder %s777_s14, 3  ;;  %p1071_p2 = scmp.ge.s32.totalorder %s777_s14, 1 }
  0x31   : > { %s536_s3 = sshll.u32 %s864_s25, 1  ;;  %s548_s7 = sshll.u32 %s773_s13, 5 }
  0x32   : > { %p913_p7 = pnand %p1071_p2, %p1070_p1  ;;  %s922_s16 = scalar_lea.hbm %s1061_s1, %s548_s7 }
  0x33   : > { %s160_s18 = scalar_lea.vmem [#allocation5], %s536_s3  ;;  %s157_s30 = scalar_lea.sflag [#allocation6], %s864_s25 }
  0x34   : > { %s1072_s29 = scalar_select %p913_p7, 1, 0 }
  0x35   : > { %s170_s19 = sshll.u32 %s160_s18, 4  ;;  %s661_s4 = scalar_lea.hbm %s922_s16, 32  ;;  %s171_s19 = int_to_ptr.vmem [resolvable:$true] %s170_s19 }
  0x36   : > { %p662_p9 = scmp.ne.s32.totalorder %s922_s16, %s661_s4  ;;  %s666_s26 = scalar_lea.hbm %s1061_s1, 64 }
  0x37   : > { %p667_p3 = scmp.lt.u32.totalorder %s922_s16, %s1061_s1  ;;  %p668_p6 = scmp.lt.u32.totalorder %s666_s26, %s661_s4 }
  0x38   : > { %p664_p11 = pnand %p662_p9, %p633_p5  ;;  %p670_p10 = scmp.lt.u32.totalorder %s661_s4, %s922_s16 }
  0x39   : > { %p669_p4 = por %p668_p6, %p667_p3 }
  0x3a   : > { %p665_p13 = pneg %p664_p11 }
  0x3b   : > { %p671_p12 = por %p670_p10, %p669_p4 }
  0x3d   : > { %p672_p1 = pnand %p671_p12, %p665_p13 }
  0x3f   : > { %675 = shalt.err (!%p672_p1)
}
  0x40   : > { %s676_s25 = scalar_lea.vmem %s171_s19, 32  ;;  %s780_s3 = smov [#allocation5]  }
  0x41   : > { %p677_p2 = scmp.ne.s32.totalorder %s171_s19, %s676_s25  ;;  %s681_s7 = sshll.u32 %s780_s3, 4  ;;  %s682_s7 = int_to_ptr.vmem [resolvable:$false] %s681_s7 }
  0x42   : > { %s683_s8 = scalar_lea.vmem %s682_s7, 64  ;;  %p684_p8 = scmp.lt.s32.totalorder %s171_s19, %s682_s7 }
  0x43   : > { %p679_p9 = pnand %p677_p2, %p633_p5  ;;  %p685_p7 = scmp.lt.s32.totalorder %s683_s8, %s676_s25 }
  0x45   : > { %p680_p11 = pneg %p679_p9  ;;  %p686_p3 = por %p685_p7, %p684_p8 }
  0x47   : > { %p687_p6 = pnand %p686_p3, %p680_p11 }
  0x49   : > { %690 = shalt.err (!%p687_p6)
}
  0x4a   : > { %567 = dma.hbm_to_vmem [thread:$0]  (!%p877_p0), %s922_s16, 32, %s171_s19, %s157_s30  }
  0x4b   : > { %p1073_p13 = scmp.ne.s32.totalorder %s1072_s29, 0 }
  0x4c   : > { %s947_s15 = sand.u32 (!%p1073_p13), 1, %s761_s10   ;;  %p1074_p5 = scmp.ne.s32.totalorder (!%p1073_p13), %s1066_s21, 0 }
  0x4d   : > { %179 = sbr.rel (%p1073_p13) target bundleno = 388 (0x184), region = 28  ;;  %s540_s18 = sshll.u32 (!%p1073_p13), %s947_s15, 3 }
  0x4e   : > { %s182_s4 = scalar_lea.sflag (!%p1073_p13), [#allocation3], %s947_s15  ;;  %s185_s6 = scalar_lea.vmem (!%p1073_p13), [#allocation2], %s540_s18 }
  0x54   : > { %744 = dma.done.wait (%p1074_p5), %s182_s4, 128  }
  0x55   : > { %746 = vsyncadd (%p1074_p5), %s182_s4, 4294967168  ;;  %s541_s5 = sshll.u32 %s947_s15, 1  ;;  %s191_s29 = scalar_lea.sflag [#allocation6], %s947_s15 }
  0x56   : > { %s194_s16 = scalar_lea.vmem [#allocation5], %s541_s5 }
  0x57   : > { %748 = dma.done.wait (%p1074_p5), %s191_s29, 32  }
  0x58   : > { %750 = vsyncadd (%p1074_p5), %s191_s29, 4294967264  ;;  %v271_v0 = vlaneseq  ;;  %vm227_vm0 = vcmask 1043456   ;;  %v964_v2 = vld [vmem:[%s194_s16] sm:$0x3]  ;;  %v223_v3 = vld [vmem:[%s185_s6] sm:$0xff]  ;;  %v781_v9 = vmov 0.0  }
  0x59   : > { %vm222_vm1 = vcmp.ne.s32.totalorder %v964_v2, 255  ;;  %v225_v5 = vcombine.high %v223_v3, %v223_v3  ;;  %v228_v6 = vsel %vm227_vm0, %v223_v3, -inf  ;;  %vm336_vm2 = vcmask 1040384   ;;  %s544_s30 = sshll.u32 %s769_s12, 4  ;;  %s218_s26 = scalar_lea.vmem [#allocation7], %s947_s15 }
  0x5a   : > { %v962_v1 = vshrl.u32 %v271_v0, 7  ;;  %v229_v8 = vrot.slane %v228_v6, 4  ;;  %v542_v10 = vsel %vm222_vm1, 1.0, %v781_v9  ;;  %v270_v30 = vsel %vm222_vm1, %v964_v2, 0  ;;  %s425_s27 = sshll.u32 %s218_s26, 4  ;;  %s1011_s3 = scalar_lea.hbm %s1062_s2, %s544_s30  ;;  %s1013_s27 = int_to_ptr.vmem [resolvable:$true] %s425_s27 }
  0x5b   : > { %v235_v11 = vsel %vm227_vm0, %v225_v5, -inf  ;;  %v782_v5 = vmov 1966171168   ;;  %s412_s12 = scalar_lea.sflag [#allocation4], %s947_s15  ;;  %s691_s7 = scalar_lea.vmem %s1013_s27, 16 }
  0x5c   : > { %v967_v4 = vsub.s32 0, %v962_v1  ;;  %v972_v7 = vsub.s32 1, %v962_v1  ;;  %v230_v14 = vmax.f32 %v228_v6, %v229_v8  ;;  %v236_v15 = vrot.slane %v235_v11, 4  ;;  %p692_p8 = scmp.ne.s32.totalorder %s1013_s27, %s691_s7  ;;  %p1075_p0 = scmp.ne.s32.totalorder %s1067_s22, 0 }
  0x5d   : > { %v308_v6 = vunpack.c.l.s4 %v782_v5  ;;  %s783_s8 = smov [#allocation7]  }
  0x5e   : > { %v329_v12 = vrot.slane %v542_v10, %v967_v4  ;;  %v333_v13 = vrot.slane %v542_v10, %v972_v7  ;;  %v231_v18 = vrot.slane %v230_v14, 2  ;;  %v237_v19 = vmax.f32 %v235_v11, %v236_v15  ;;  %p693_p7 = pnand %p692_p8, %p1075_p0  ;;  %s695_s18 = sshll.u32 %s783_s8, 4  ;;  %s696_s18 = int_to_ptr.vmem [resolvable:$false] %s695_s18 }
  0x5f   : > { %v276_v32 = vrot.slane %v270_v30, %v967_v4  ;;  %v280_v33 = vrot.slane %v270_v30, %v972_v7  ;;  %s697_s4 = scalar_lea.vmem %s696_s18, 32  ;;  %p698_p10 = scmp.lt.s32.totalorder %s1013_s27, %s696_s18 }
  0x60   : > { %v337_v16 = vsel %vm336_vm2, %v329_v12, 0.0  ;;  %v338_v17 = vsel %vm336_vm2, %v333_v13, 0.0  ;;  %v232_v21 = vmax.f32 %v230_v14, %v231_v18  ;;  %v238_v22 = vrot.slane %v237_v19, 2  ;;  %p694_p4 = pneg %p693_p7  ;;  %p699_p12 = scmp.lt.s32.totalorder %s697_s4, %s691_s7 }
  0x61   : > { %v339_v20 = vadd.f32 %v338_v17, %v337_v16  ;;  %vm281_vm3 = vcmp.eq.s32.totalorder %v962_v1, %v276_v32  ;;  %vm282_vm4 = vcmp.eq.s32.totalorder %v962_v1, %v280_v33  ;;  %v309_v13 = vunpack.c.0.s8 %v308_v6 }
  0x62   : > { %v233_v23 = vrot.slane %v232_v21, 1  ;;  %v239_v24 = vmax.f32 %v237_v19, %v238_v22  ;;  %p700_p1 = por %p699_p12, %p698_p10 }
  0x63   : > { %340 = vadd.xlane.f32.xlu0 %v339_v20  ;;  %v312_v18 = vsub.s32 %v309_v13, %v962_v1 }
  0x64   : > { %v234_v25 = vmax.f32 %v232_v21, %v233_v23  ;;  %v240_v26 = vrot.slane %v239_v24, 1  ;;  %p701_p2 = pnand %p700_p1, %p694_p4 }
  0x66   : > { %v241_v27 = vmax.f32 %v239_v24, %v240_v26 }
  0x68   : > { %v244_v28 = vcombine.low %v234_v25, %v241_v27 }
  0x6a   : > { %v246_v29 = vsub.f32 %v223_v3, %v244_v28 }
  0x6c   : > { %v247_v31 = vmul.f32 1.442695, %v246_v29  ;;  %v284_v34 = vcombine.high %v246_v29, %v246_v29  ;;  %v286_v35 = vsel %vm281_vm3, %v246_v29, 0.0 }
  0x6d   : > { %v288_v38 = vsel %vm227_vm0, %v286_v35, 0.0 }
  0x6e   : > { %625 = vpow2.f32 %v247_v31  ;;  %v287_v36 = vsel %vm282_vm4, %v284_v34, 0.0  ;;  %v289_v43 = vrot.slane %v288_v38, 4 }
  0x6f   : > { %v295_v41 = vsel %vm227_vm0, %v287_v36, 0.0 }
  0x70   : > { %v296_v47 = vrot.slane %v295_v41, 4  ;;  %v290_v50 = vadd.f32 %v289_v43, %v288_v38 }
  0x72   : > { %v297_v53 = vadd.f32 %v296_v47, %v295_v41  ;;  %v291_v56 = vrot.slane %v290_v50, 2 }
  0x74   : > { %v298_v59 = vrot.slane %v297_v53, 2  ;;  %v292_v61 = vadd.f32 %v291_v56, %v290_v50 }
  0x76   : > { %v299_v62 = vadd.f32 %v298_v59, %v297_v53  ;;  %v293_v63 = vrot.slane %v292_v61, 1 }
  0x78   : > { %v626_v37 = vpop.eup %625  ;;  %v300_v3 = vrot.slane %v299_v62, 1  ;;  %v294_v8 = vadd.f32 %v293_v63, %v292_v61 }
  0x79   : > { %v250_v39 = vcombine.high %v626_v37, %v626_v37  ;;  %v252_v40 = vsel %vm227_vm0, %v626_v37, 0.0 }
  0x7a   : > { %v253_v42 = vrot.slane %v252_v40, 4  ;;  %v301_v12 = vadd.f32 %v300_v3, %v299_v62 }
  0x7b   : > { %v259_v44 = vsel %vm227_vm0, %v250_v39, 0.0 }
  0x7c   : > { %v254_v45 = vadd.f32 %v253_v42, %v252_v40  ;;  %v260_v46 = vrot.slane %v259_v44, 4 }
  0x7e   : > { %v255_v48 = vrot.slane %v254_v45, 2  ;;  %v261_v49 = vadd.f32 %v260_v46, %v259_v44 }
  0x80   : > { %v256_v51 = vadd.f32 %v255_v48, %v254_v45  ;;  %v262_v52 = vrot.slane %v261_v49, 2 }
  0x82   : > { %v257_v54 = vrot.slane %v256_v51, 1  ;;  %v263_v55 = vadd.f32 %v262_v52, %v261_v49 }
  0x84   : > { %v258_v57 = vadd.f32 %v257_v54, %v256_v51  ;;  %v264_v58 = vrot.slane %v263_v55, 1  ;;  %v400_v51 = vand.u32 127, %v271_v0 }
  0x86   : > { %v265_v60 = vadd.f32 %v264_v58, %v263_v55  ;;  %627 = vlog2.f32 %v258_v57  ;;  %vm403_vm6 = vcmp.eq.s32.totalorder %v400_v51, 2  ;;  %vm402_vm7 = vcmp.eq.s32.totalorder %v400_v51, 1 }
  0x87   : > { %vm401_vm8 = vcmp.eq.s32.totalorder %v400_v51, 0 }
  0x88   : > { %629 = vlog2.f32 %v265_v60 }
  0x90   : > { %v628_v10 = vpop.eup %627 }
  0x91   : > { %v267_v11 = vmul.f32 0.6931472, %v628_v10 }
  0x92   : > { %v630_v14 = vpop.eup %629 }
  0x93   : > { %v269_v15 = vmul.f32 0.6931472, %v630_v14  ;;  %v302_v16 = vsub.f32 %v267_v11, %v294_v8 }
  0x95   : > { %v303_v17 = vsub.f32 %v269_v15, %v301_v12 }
  0x97   : > { %v306_v19 = vcombine.low %v302_v16, %v303_v17 }
  0x99   : > { %v313_v20 = vrot.slane %v306_v19, %v312_v18 }
  0x9b   : > { %v320_v21 = vrot.slane %v313_v20, %v312_v18 }
  0x9d   : > { %v322_v22 = vsel %vm222_vm1, %v320_v21, 0.0 }
  0x9e   : > { %vm349_vm5 = vcmp.gt.f32.partialorder %v322_v22, 0.35667494 }
  0x9f   : > { %v375_v23 = vsel %vm349_vm5, %v322_v22, 0.0  ;;  %v543_v24 = vsel %vm349_vm5, 1.0, %v781_v9 }
  0xa0   : > { %v380_v25 = vrot.slane %v375_v23, %v967_v4  ;;  %v384_v26 = vrot.slane %v375_v23, %v972_v7  ;;  %v356_v27 = vrot.slane %v543_v24, %v967_v4  ;;  %v360_v28 = vrot.slane %v543_v24, %v972_v7 }
  0xa2   : > { %v387_v1 = vsel %vm336_vm2, %v380_v25, 0.0  ;;  %v388_v29 = vsel %vm336_vm2, %v384_v26, 0.0  ;;  %v363_v30 = vsel %vm336_vm2, %v356_v27, 0.0  ;;  %v364_v2 = vsel %vm336_vm2, %v360_v28, 0.0 }
  0xa3   : > { %v389_v31 = vadd.f32 %v388_v29, %v387_v1  ;;  %v365_v32 = vadd.f32 %v364_v2, %v363_v30 }
  0xa5   : > { %390 = vadd.xlane.f32.xlu1 %v389_v31  ;;  %366 = vadd.xlane.f32.xlu0 %v365_v32 }
  0xf0   : > { %v341_v9 = vpop.xlane.xlu0 %340 }
  0xf1   : > { %v342_v33 = vrot.slane %v341_v9, 4 }
  0xf3   : > { %v343_v34 = vadd.f32 %v342_v33, %v341_v9 }
  0xf5   : > { %v344_v35 = vrot.slane %v343_v34, 2 }
  0xf7   : > { %v345_v36 = vadd.f32 %v344_v35, %v343_v34 }
  0xf9   : > { %v346_v4 = vrot.slane %v345_v36, 1 }
  0xfb   : > { %v347_v37 = vadd.f32 %v346_v4, %v345_v36 }
  0xfd   : > { %549 = vpush %v347_v37 }
 0x12e   : > { %s550_s21 = spop %549 }
 0x12f   : > { %v408_v55 = vstv %s550_s21 }
 0x132   : > { %v391_v7 = vpop.xlane.xlu1 %390  ;;  %v367_v38 = vpop.xlane.xlu0 %366 }
 0x133   : > { %v392_v39 = vrot.slane %v391_v7, 4  ;;  %v368_v40 = vrot.slane %v367_v38, 4 }
 0x135   : > { %v393_v41 = vadd.f32 %v392_v39, %v391_v7  ;;  %v369_v42 = vadd.f32 %v368_v40, %v367_v38 }
 0x137   : > { %v394_v43 = vrot.slane %v393_v41, 2  ;;  %v370_v44 = vrot.slane %v369_v42, 2 }
 0x139   : > { %v395_v45 = vadd.f32 %v394_v43, %v393_v41  ;;  %v371_v46 = vadd.f32 %v370_v44, %v369_v42 }
 0x13b   : > { %v372_v47 = vrot.slane %v371_v46, 1  ;;  %v396_v48 = vrot.slane %v395_v45, 1 }
 0x13d   : > { %v373_v49 = vadd.f32 %v372_v47, %v371_v46  ;;  %v397_v50 = vadd.f32 %v396_v48, %v395_v45 }
 0x13f   : > { %551 = vpush %v373_v49 }
 0x140   : > { %553 = vpush %v397_v50 }
 0x170   : > { %s552_s19 = spop %551 }
 0x171   : > { %v406_v52 = vstv %s552_s19  ;;  %s554_s20 = spop %553 }
 0x172   : > { %v404_v53 = vstv %s554_s20 }
 0x173   : > { %v405_v54 = vsel %vm403_vm6, %v404_v53, 0.0 }
 0x174   : > { %v407_v56 = vsel %vm402_vm7, %v406_v52, %v405_v54 }
 0x175   : > { %v409_v0 = vsel %vm401_vm8, %v408_v55, %v407_v56 }
 0x176   : > { %410 = vst [vmem:[%s218_s26] sm:$0x1] %v409_v0 }
 0x177   : > { %704 = shalt.err (!%p701_p2)
}
 0x178   : > { %s705_s15 = scalar_lea.hbm %s1011_s3, 16  ;;  %s709_s29 = scalar_lea.hbm %s1062_s2, 32 }
 0x179   : > { %p706_p9 = scmp.ne.s32.totalorder %s1011_s3, %s705_s15  ;;  %p710_p6 = scmp.lt.u32.totalorder %s1011_s3, %s1062_s2 }
 0x17a   : > { %p711_p13 = scmp.lt.u32.totalorder %s709_s29, %s705_s15  ;;  %p713_p8 = scmp.lt.u32.totalorder %s705_s15, %s1011_s3 }
 0x17b   : > { %p707_p11 = pnand %p706_p9, %p1075_p0 }
 0x17c   : > { %p712_p5 = por %p711_p13, %p710_p6 }
 0x17d   : > { %p708_p3 = pneg %p707_p11 }
 0x17e   : > { %p714_p7 = por %p713_p8, %p712_p5 }
 0x180   : > { %p715_p4 = pnand %p714_p7, %p708_p3 }
 0x182   : > { %718 = shalt.err (!%p715_p4)
}
 0x183   : > { %559 = dma.vmem_to_hbm [thread:$0]  (%p1075_p0), %s1013_s27, 16, %s1011_s3, %s412_s12  }
 0x184 PF: > { %s437_s19 = sand.u32 1, %s757_s9   ;;  %p1076_p10 = scmp.ne.s32.totalorder %s1068_s24, 0 }
 0x185   : > { %p1077_p12 = scmp.ge.s32.totalorder %s777_s14, 2  ;;  %s438_s30 = scalar_lea.sflag [#allocation4], %s437_s19 }
 0x187   : > { %p569_p1 = pnand %p1077_p12, %p1076_p10 }
 0x189   : > { %752 = dma.done.wait (!%p569_p1), %s438_s30, 16  }
 0x18a   : > { %754 = vsyncadd (!%p569_p1), %s438_s30, 4294967280  ;;  %s21_s14 = sadd.s32 1, %s777_s14   ;;  %s1078_s9 = smov %s761_s10 }
 0x18b   : > { %p18_p2 = scmp.ge.s32.totalorder %s21_s14, 4   ;;  %s1079_s10 = smov %s765_s11 }
 0x18c   : > { %s1080_s11 = smov %s855_s23  ;;  %s1081_s12 = smov %s773_s13 }
 0x18d   : > { %s1082_s13 = smov %s1084_s17  ;;  %20 = sbr.rel (!%p18_p2) target bundleno = 8 (0x8), region = 86 }
 0x194   :  { %442 = vsyncpa [#allocation3], 1 }
 0x195   :  { %444 = vsyncpa [#allocation3 + $0x1], 1 }
 0x196   :  { %445 = vsyncpa [#allocation6], 1 }
 0x197   :  { %447 = vsyncpa [#allocation6 + $0x1], 1 }
 0x198   :  { %448 = vsyncpa [#allocation4], 1 }
 0x199   :  { %450 = vsyncpa [#allocation4 + $0x1], 1 }

</bundles_post_ra>
